<compile_context>
chip_gen: v6e
topology: v6e:2x2x1
jax: 0.10.0
libtpu: 0.0.40
codegen_flags: <defaults>
</compile_context>

<pallas_src>
import jax
import jax.numpy as jnp
from jax.experimental import pallas as pl
from jax.experimental.pallas import tpu as pltpu


# ---------------------------------------------------------------------------
# Kernel
# ---------------------------------------------------------------------------
def _identity_kernel(ids_ref, out_ref):
    out_ref[...] = ids_ref[...]


# ---------------------------------------------------------------------------
# Tiling policy (bytes-based)
# ---------------------------------------------------------------------------
_GRIDLESS_MAX_BYTES = 4 * 1024 * 1024      # single full-array block below this
_TARGET_BLOCK_BYTES = 2 * 1024 * 1024      # ~2 MiB tiles: DMA-bound, v7x-safe
_V5E_SCOPED_VMEM = 16 * 1024 * 1024        # smallest default scoped VMEM


def _largest_divisor_tile(dim, unit, max_units):
    """Largest multiple of `unit` that divides `dim`, capped at unit*max_units.

    Returns 0 if `dim` is not a multiple of `unit`.
    """
    if dim % unit != 0:
        return 0
    units = dim // unit
    k = max(1, min(units, max_units))
    while units % k != 0:
        k -= 1
    return k * unit


def _pick_blocks(batch, seq, itemsize, target_block_bytes):
    """Pick (tile_b, tile_s) with tile_b % 8 == 0 (or == batch) and
    tile_s % 128 == 0, targeting ~target_block_bytes per block."""
    # Sublane (batch) tile: keep whole batch unless even one 128-lane column
    # of it exceeds the target; then shrink in multiples of 8 if divisible.
    tile_b = batch
    if batch * 128 * itemsize > target_block_bytes and batch % 8 == 0:
        max_units = max(1, target_block_bytes // (8 * 128 * itemsize))
        tb = _largest_divisor_tile(batch, 8, max_units)
        if tb:
            tile_b = tb
    # Lane (seq) tile, given the chosen batch tile.
    max_units = max(1, target_block_bytes // max(1, tile_b * 128 * itemsize))
    tile_s = _largest_divisor_tile(seq, 128, max_units)
    if tile_s == 0:
        return None
    return tile_b, tile_s


# ---------------------------------------------------------------------------
# Pallas identity (only used when a device kernel is explicitly requested)
# ---------------------------------------------------------------------------
def _identity_pallas(input_ids,
                     gridless_max_bytes=_GRIDLESS_MAX_BYTES,
                     target_block_bytes=_TARGET_BLOCK_BYTES):
    batch, seq = input_ids.shape
    itemsize = jnp.dtype(input_ids.dtype).itemsize
    total_bytes = batch * seq * itemsize
    out_shape = jax.ShapeDtypeStruct((batch, seq), input_ids.dtype)

    # --- tiled path: MiB-scale, full-vreg blocks, pipelined DMA -----------
    if total_bytes > gridless_max_bytes:
        blocks = _pick_blocks(batch, seq, itemsize, target_block_bytes)
        if blocks is not None:
            tile_b, tile_s = blocks
            return pl.pallas_call(
                _identity_kernel,
                out_shape=out_shape,
                grid=(batch // tile_b, seq // tile_s),
                in_specs=[pl.BlockSpec((tile_b, tile_s), lambda i, j: (i, j))],
                out_specs=pl.BlockSpec((tile_b, tile_s), lambda i, j: (i, j)),
                compiler_params=pltpu.CompilerParams(
                    dimension_semantics=("parallel", "parallel")
                ),
            )(input_ids)

    # --- gridless path: single full-array VMEM block -----------------------
    # Input and output VMEM buffers are distinct, so budget 2x the array plus
    # slack; raise the scoped-VMEM limit explicitly if it would not fit the
    # smallest default (v5e, 16 MiB).
    vmem_needed = 2 * total_bytes + (1 << 20)
    compiler_params = None
    if vmem_needed > _V5E_SCOPED_VMEM:
        compiler_params = pltpu.CompilerParams(vmem_limit_bytes=vmem_needed)
    return pl.pallas_call(
        _identity_kernel,
        out_shape=out_shape,
        in_specs=[pl.BlockSpec(memory_space=pltpu.MemorySpace.VMEM)],
        out_specs=pl.BlockSpec(memory_space=pltpu.MemorySpace.VMEM),
        compiler_params=compiler_params,
    )(input_ids)


# ---------------------------------------------------------------------------
# Forward wrapper (matches OllamaWrapper.forward signature)
# ---------------------------------------------------------------------------
def ollama_wrapper_forward(input_ids, attention_mask=None, *, use_pallas=False):
    """Pallas version of OllamaWrapper.forward (tensor path only).

    attention_mask is accepted for signature parity but never touched (no DMA,
    no ones_like), exactly like the reference forward() which ignores it.

    Default path moves zero bytes (returns input_ids); set use_pallas=True to
    route the identity through an actual Pallas TPU kernel.
    """
    del attention_mask
    if not use_pallas:
        # The module's tensor path is a pure identity: no kernel launch, no
        # HBM traffic.  Nothing a kernel does can beat this.
        return input_ids
    return _identity_pallas(input_ids)


if __name__ == "__main__":
    key = jax.random.PRNGKey(0)
    k_ids, k_ids2 = jax.random.split(key)

    # --- small shapes, matching the module's toy usage --------------------
    batch, seq = 2, 8
    input_ids = jax.random.randint(k_ids, (batch, seq), 0, 32000, dtype=jnp.int32)

    # Default (recommended) path: zero-copy identity.
    out_fast = ollama_wrapper_forward(input_ids)
    out_fast = jax.block_until_ready(out_fast)
    assert out_fast.shape == (batch, seq)
    assert bool(jnp.all(out_fast == input_ids))

    # Pallas path, gridless single VMEM block (array is tiny).
    out_pallas = ollama_wrapper_forward(input_ids, use_pallas=True)
    out_pallas = jax.block_until_ready(out_pallas)
    assert out_pallas.shape == (batch, seq)
    assert bool(jnp.all(out_pallas == input_ids))

    # --- exercise the tiled path with modest shapes by shrinking the
    #     bytes thresholds (so we do not need to allocate multi-MiB arrays) --
    batch2, seq2 = 8, 1024
    input_ids2 = jax.random.randint(
        k_ids2, (batch2, seq2), 0, 32000, dtype=jnp.int32
    )
    out_tiled = _identity_pallas(
        input_ids2, gridless_max_bytes=4 * 1024, target_block_bytes=8 * 1024
    )
    out_tiled = jax.block_until_ready(out_tiled)
    assert out_tiled.shape == (batch2, seq2)
    assert bool(jnp.all(out_tiled == input_ids2))

    print("KERNEL_OK")
</pallas_src>

<mosaic_0001>
module attributes {stable_mosaic.version = 11 : i64} {
  func.func @_identity_kernel(%arg0: memref<2x8xi32, #tpu.memory_space<vmem>>, %arg1: memref<2x8xi32, #tpu.memory_space<vmem>>) attributes {dimension_semantics = [], scalar_prefetch = 0 : i64, scratch_operands = 0 : i64, tpu.core_type = #tpu.core_type<tc>} {
    %c0 = arith.constant 0 : index
    %c0_0 = arith.constant 0 : index
    %0 = vector.load %arg0[%c0, %c0_0] : memref<2x8xi32, #tpu.memory_space<vmem>>, vector<2x8xi32>
    %c0_1 = arith.constant 0 : index
    %c0_2 = arith.constant 0 : index
    %1 = vector.load %arg1[%c0_1, %c0_2] : memref<2x8xi32, #tpu.memory_space<vmem>>, vector<2x8xi32>
    tpu.vector_store %arg1[%c0_1, %c0_2], %0 {strides = array<i32>} : memref<2x8xi32, #tpu.memory_space<vmem>>, vector<2x8xi32>,
    return
  }
}

</mosaic_0001>

<bundles_post_ra>
// kernel: tpu_custom_call.1
= control target key start
LH: loop header
LB: loop body
LE: loop exit
PB: predicated region body
PF: predicated region fallthrough
CT: control target
= control target key end

     0   :  { %6 = vsyncpa [#allocation3], 0  ;;  %s103_s0 = inlined_call_operand.hbm [shape: s32[2,8], index: 0, kind: input, shape index: {}]   ;;  %s104_s1 = inlined_call_operand.hbm [shape: s32[2,8], index: 1, kind: output, shape index: {}]  }
   0x1   :  { %7 = vsyncpa [#allocation4], 0  ;;  %s85_s6 = smov [#allocation2]  }
   0x2   :  { %s14_s7 = sshll.u32 %s85_s6, 4  ;;  %s15_s7 = int_to_ptr.vmem [resolvable:$true] %s14_s7 }
   0x3   :  { %s49_s8 = scalar_lea.vmem %s15_s7, 32  ;;  %p54_p1 = scmp.lt.s32.totalorder %s15_s7, %s15_s7 }
   0x4   :  { %p50_p0 = scmp.ne.s32.totalorder %s15_s7, %s49_s8  ;;  %p55_p2 = scmp.lt.s32.totalorder %s49_s8, %s49_s8 }
   0x6   :  { %p56_p3 = por %p55_p2, %p54_p1 }
   0x8   :  { %p57_p4 = pnand %p56_p3, %p50_p0 }
   0xa   :  { %60 = shalt.err (!%p57_p4)
}
   0xb   :  { %17 = dma.hbm_to_vmem [thread:$0]  %s103_s0, 32, %s15_s7, [#allocation3]  }
   0xc   :  { %81 = dma.done.wait [#allocation3], 32  }
   0xd   :  { %82 = vsyncadd [#allocation3], 4294967264  ;;  %s86_s11 = smov [#allocation5]   ;;  %vm22_vm0 = vcmask 58368   ;;  %v21_v0 = vld [vmem:[#allocation2] sm:$0x3] }
   0xe   :  { %s30_s12 = sshll.u32 %s86_s11, 4  ;;  %23 = vst.msk [vmem:[#allocation5] sm:$0x3] %vm22_vm0, %v21_v0  ;;  %s31_s12 = int_to_ptr.vmem [resolvable:$true] %s30_s12 }
   0xf   :  { %s61_s13 = scalar_lea.vmem %s31_s12, 32  ;;  %p66_p6 = scmp.lt.s32.totalorder %s31_s12, %s31_s12 }
  0x10   :  { %p62_p5 = scmp.ne.s32.totalorder %s31_s12, %s61_s13  ;;  %p67_p7 = scmp.lt.s32.totalorder %s61_s13, %s61_s13 }
  0x12   :  { %p68_p8 = por %p67_p7, %p66_p6 }
  0x14   :  { %p69_p9 = pnand %p68_p8, %p62_p5 }
  0x16   :  { %72 = shalt.err (!%p69_p9)
}
  0x17   :  { %33 = dma.vmem_to_hbm [thread:$0]  %s31_s12, 32, %s104_s1, [#allocation4]  }
  0x18   :  { %83 = dma.done.wait [#allocation4], 32  }
  0x19   :  { %84 = vsyncadd [#allocation4], 4294967264 }
  0x1a   :  { %37 = vsyncpa [#allocation3], 1 }
  0x1b   :  { %38 = vsyncpa [#allocation4], 1 }

</bundles_post_ra>
